<compile_context>
chip_gen: v6e
topology: v6e:2x2x1
jax: 0.10.0
libtpu: 0.0.40
codegen_flags: <defaults>
</compile_context>

<pallas_src>
import jax
import jax.numpy as jnp
from jax.experimental import pallas as pl
from jax.experimental.pallas import tpu as pltpu


def _round_up(x, m):
    return ((x + m - 1) // m) * m


# ----------------------------------------------------------------------------
# Pallas kernel: fused (all heads at once) MLP over one batch tile.
# ----------------------------------------------------------------------------
def _fused_mlp_heads_kernel(x_ref, w1_ref, b1_ref, w2_ref, b2_ref, o_ref):
    # x_ref : (B_tile, F_pad)   batch tile of features (compute dtype)
    # w1_ref: (F_pad, N1_pad)   fused first-layer weights (compute dtype)
    # b1_ref: (1, N1_pad)       fused first-layer bias (f32)
    # w2_ref: (N1_pad, N2)      block-diagonal second-layer weights (compute dtype)
    # b2_ref: (1, N2)           second-layer bias, zero-padded (f32)
    # o_ref : (B_tile, N2)      lane-dense output slab (f32)

    # First layer: single wide MXU matmul, f32 accumulation; bias+ReLU in f32.
    h = jnp.dot(x_ref[...], w1_ref[...], preferred_element_type=jnp.float32)
    h = jnp.maximum(h + b1_ref[...], 0.0)

    # Second layer: block-diagonal matmul with full 128-wide N.  Operands in
    # the compute dtype (bf16 by default), accumulation in f32.
    h = h.astype(w2_ref.dtype)
    y = jnp.dot(h, w2_ref[...], preferred_element_type=jnp.float32) + b2_ref[...]
    o_ref[...] = y.astype(o_ref.dtype)


# ----------------------------------------------------------------------------
# One-time parameter preparation (hoisted out of the per-call forward).
# ----------------------------------------------------------------------------
def prepare_mlp_head_params(w1, b1, w2, b2, *, compute_dtype=jnp.bfloat16):
    """w1: (out_dim, F, 64); b1: (out_dim, 1, 64); w2: (out_dim, 64, 1);
    b2: (out_dim, 1, 1).  Returns fused / padded constants for the kernel."""
    out_dim, F, hid = w1.shape                 # hid == 64
    N1 = out_dim * hid
    F_pad = _round_up(F, 128)
    N1_pad = _round_up(N1, 128)
    N2 = _round_up(out_dim, 128)               # lane-dense output width

    # Fused first layer: column h*64+j <- w1[h, :, j]; zero rows beyond F.
    w1_f = jnp.transpose(w1, (1, 0, 2)).reshape(F, N1).astype(compute_dtype)
    w1_fused = jnp.zeros((F_pad, N1_pad), compute_dtype).at[:F, :N1].set(w1_f)
    b1_fused = jnp.zeros((1, N1_pad), jnp.float32).at[0, :N1].set(
        b1.reshape(N1).astype(jnp.float32))

    # Block-diagonal second layer: rows h*64:(h+1)*64, column h <- w2[h, :, 0].
    eye = jnp.eye(out_dim, N2, dtype=jnp.float32)                 # (out_dim, N2)
    w2_bd = (w2[:, :, 0].astype(jnp.float32)[:, :, None] * eye[:, None, :]
             ).reshape(N1, N2)
    w2_fused = jnp.zeros((N1_pad, N2), compute_dtype).at[:N1, :].set(
        w2_bd.astype(compute_dtype))
    b2_fused = jnp.zeros((1, N2), jnp.float32).at[0, :out_dim].set(
        b2.reshape(out_dim).astype(jnp.float32))

    return {
        "w1_fused": w1_fused, "b1_fused": b1_fused,
        "w2_fused": w2_fused, "b2_fused": b2_fused,
        "F": F, "F_pad": F_pad, "N1_pad": N1_pad, "N2": N2,
        "out_dim": out_dim, "compute_dtype": compute_dtype,
    }


# ----------------------------------------------------------------------------
# Per-call forward over the prepared (fused) head parameters.
# ----------------------------------------------------------------------------
def mlp_heads_forward(features, fused, *, max_b_tile=512):
    """features: (B, F).  Returns (B, out_dim) f32 (== torch.cat(head outs, dim=1))."""
    B, F = features.shape
    assert F == fused["F"], "feature dim mismatch with prepared params"
    F_pad, N1_pad, N2 = fused["F_pad"], fused["N1_pad"], fused["N2"]
    out_dim = fused["out_dim"]
    cdt = fused["compute_dtype"]

    # Only the contraction (F) axis needs zero padding; skip entirely when
    # F is already lane-aligned (e.g. Swin 768/1024).  No batch padding.
    x = features.astype(cdt)
    if F != F_pad:
        x = jnp.pad(x, ((0, 0), (0, F_pad - F)))

    # Batch tiling: partial last tile allowed (garbage rows discarded by the
    # (B, N2) out_shape); aim for >= 2 tiles when B is large enough so v7x's
    # two TensorCores both get work, without round-up-to-tile waste.
    if B <= 8:
        B_tile = B                              # block dim == full array dim
    else:
        n_tiles = max(2, pl.cdiv(B, max_b_tile))
        B_tile = min(_round_up(pl.cdiv(B, n_tiles), 8), _round_up(max_b_tile, 8))
    grid = (pl.cdiv(B, B_tile),)

    # Explicit VMEM budget: double-buffered inputs/outputs + f32 hidden.
    in_bytes = jnp.dtype(cdt).itemsize
    vmem_est = (2 * B_tile * F_pad * in_bytes        # x tiles
                + 2 * F_pad * N1_pad * in_bytes      # fused W1 (resident)
                + 2 * N1_pad * N2 * in_bytes         # block-diag W2
                + 2 * (N1_pad + N2) * 4              # biases
                + 2 * B_tile * N2 * 4                # output tiles
                + B_tile * N1_pad * (4 + in_bytes))  # hidden (f32 + cast copy)
    vmem_limit = int(min(vmem_est + (2 << 20), 64 << 20))

    out = pl.pallas_call(
        _fused_mlp_heads_kernel,
        out_shape=jax.ShapeDtypeStruct((B, N2), jnp.float32),
        grid=grid,
        in_specs=[
            pl.BlockSpec((B_tile, F_pad), lambda i: (i, 0)),   # features tile
            pl.BlockSpec((F_pad, N1_pad), lambda i: (0, 0)),   # fused W1 (resident)
            pl.BlockSpec((1, N1_pad), lambda i: (0, 0)),       # fused b1
            pl.BlockSpec((N1_pad, N2), lambda i: (0, 0)),      # block-diag W2
            pl.BlockSpec((1, N2), lambda i: (0, 0)),           # b2
        ],
        out_specs=pl.BlockSpec((B_tile, N2), lambda i: (i, 0)),
        compiler_params=pltpu.CompilerParams(
            dimension_semantics=("parallel",),                 # split B tiles on v7x
            vmem_limit_bytes=vmem_limit,
        ),
    )(x, fused["w1_fused"], fused["b1_fused"], fused["w2_fused"], fused["b2_fused"])

    # Lane-dense slab -> (B, out_dim), matching torch.cat(outputs, dim=1).
    return out[:, :out_dim]


# ----------------------------------------------------------------------------
# Stubbed base model (plain JAX glue): global average pool + linear projection.
# ----------------------------------------------------------------------------
def stub_base_model(x, m, proj_w, proj_b):
    # x: (B, C, H, W) NCHW
    del m
    pooled = jnp.mean(x, axis=(2, 3))                 # (B, C)
    features = pooled @ proj_w + proj_b               # (B, num_features)
    drloc_loss = jnp.float32(0.0)
    return features, drloc_loss


def mlp_layer_forward(x, m, params, fused_heads):
    features, drloc_loss = stub_base_model(x, m, params["proj_w"], params["proj_b"])
    outputs = mlp_heads_forward(features, fused_heads)
    return outputs, drloc_loss


# ----------------------------------------------------------------------------
# Deterministic parameter init + run.
# ----------------------------------------------------------------------------
def init_params(key, in_channels, num_features, out_dim):
    k = jax.random.split(key, 6)
    scale = 0.05
    return {
        "proj_w": scale * jax.random.normal(k[0], (in_channels, num_features), jnp.float32),
        "proj_b": scale * jax.random.normal(k[1], (num_features,), jnp.float32),
        "w1": scale * jax.random.normal(k[2], (out_dim, num_features, 64), jnp.float32),
        "b1": scale * jax.random.normal(k[3], (out_dim, 1, 64), jnp.float32),
        "w2": scale * jax.random.normal(k[4], (out_dim, 64, 1), jnp.float32),
        "b2": scale * jax.random.normal(k[5], (out_dim, 1, 1), jnp.float32),
    }


if __name__ == "__main__":
    key = jax.random.PRNGKey(0)
    kx, kp = jax.random.split(key)

    B, C, H, W = 2, 4, 16, 16           # small NCHW input
    num_features = 32                   # base_model.num_features (synthetic)
    out_dim = 4                         # number of MLP heads

    x = jax.random.normal(kx, (B, C, H, W), jnp.float32)
    m = None                            # unused by the stubbed base model
    params = init_params(kp, C, num_features, out_dim)

    # One-time parameter prep (hoisted out of the forward): bf16 default path
    # plus an f32 path used only for the tight numeric check.
    fused_bf16 = prepare_mlp_head_params(
        params["w1"], params["b1"], params["w2"], params["b2"],
        compute_dtype=jnp.bfloat16)
    fused_f32 = prepare_mlp_head_params(
        params["w1"], params["b1"], params["w2"], params["b2"],
        compute_dtype=jnp.float32)

    # Main (bf16 MXU) forward.
    outputs, drloc_loss = mlp_layer_forward(x, m, params, fused_bf16)
    outputs = jax.block_until_ready(outputs)
    drloc_loss = jax.block_until_ready(drloc_loss)

    # Pure-JAX reference of the heads.
    features, _ = stub_base_model(x, m, params["proj_w"], params["proj_b"])
    ref_cols = []
    for h in range(out_dim):
        hdn = jnp.maximum(features @ params["w1"][h] + params["b1"][h], 0.0)
        ref_cols.append(hdn @ params["w2"][h] + params["b2"][h])
    ref = jnp.concatenate(ref_cols, axis=1)

    assert outputs.shape == (B, out_dim)
    # bf16 operands -> loosened tolerance.
    assert jnp.allclose(outputs, ref, atol=2e-2, rtol=2e-2)

    # f32 path keeps the tight check.
    outputs_f32 = jax.block_until_ready(mlp_heads_forward(features, fused_f32))
    assert jnp.allclose(outputs_f32, ref, atol=1e-4, rtol=1e-4)

    print("KERNEL_OK")
</pallas_src>

<mosaic_0001>
module attributes {stable_mosaic.version = 11 : i64} {
  func.func @_fused_mlp_heads_kernel(%arg0: i32, %arg1: memref<2x128xbf16, #tpu.memory_space<vmem>>, %arg2: memref<128x256xbf16, #tpu.memory_space<vmem>>, %arg3: memref<1x256xf32, #tpu.memory_space<vmem>>, %arg4: memref<256x128xbf16, #tpu.memory_space<vmem>>, %arg5: memref<1x128xf32, #tpu.memory_space<vmem>>, %arg6: memref<2x128xf32, #tpu.memory_space<vmem>>) attributes {dimension_semantics = [#tpu.dimension_semantics<parallel>], iteration_bounds = array<i64: 1>, scalar_prefetch = 0 : i64, scratch_operands = 0 : i64, tpu.core_type = #tpu.core_type<tc>, window_params = [{transform_indices = @transform_0, window_bounds = array<i64: 2, 128>}, {pipeline_mode = #tpu.pipeline_mode<synchronous>, transform_indices = @transform_1, window_bounds = array<i64: 128, 256>}, {pipeline_mode = #tpu.pipeline_mode<synchronous>, transform_indices = @transform_2, window_bounds = array<i64: 1, 256>}, {pipeline_mode = #tpu.pipeline_mode<synchronous>, transform_indices = @transform_3, window_bounds = array<i64: 256, 128>}, {pipeline_mode = #tpu.pipeline_mode<synchronous>, transform_indices = @transform_4, window_bounds = array<i64: 1, 128>}, {transform_indices = @transform_5, window_bounds = array<i64: 2, 128>}]} {
    %c0 = arith.constant 0 : index
    %c0_0 = arith.constant 0 : index
    %0 = vector.load %arg1[%c0, %c0_0] : memref<2x128xbf16, #tpu.memory_space<vmem>>, vector<2x128xbf16>
    %c0_1 = arith.constant 0 : index
    %c0_2 = arith.constant 0 : index
    %1 = vector.load %arg2[%c0_1, %c0_2] : memref<128x256xbf16, #tpu.memory_space<vmem>>, vector<128x256xbf16>
    %cst = arith.constant dense<0.000000e+00> : vector<2x256xf32>
    %2 = tpu.matmul %0, %1, %cst {dimension_numbers = #tpu.dot_dimension_numbers<[1], [0], [0], [1], [0, 0, 1, 1], [], []>} : vector<2x128xbf16>, vector<128x256xbf16>, vector<2x256xf32> -> vector<2x256xf32>
    %c0_3 = arith.constant 0 : index
    %c0_4 = arith.constant 0 : index
    %3 = vector.load %arg3[%c0_3, %c0_4] : memref<1x256xf32, #tpu.memory_space<vmem>>, vector<1x256xf32>
    %4 = vector.broadcast %3 : vector<1x256xf32> to vector<2x256xf32>
    %5 = arith.addf %2, %4 : vector<2x256xf32>
    %cst_5 = arith.constant 0.000000e+00 : f32
    %6 = vector.broadcast %cst_5 : f32 to vector<2x256xf32>
    %7 = arith.maximumf %5, %6 : vector<2x256xf32>
    %8 = arith.truncf %7 : vector<2x256xf32> to vector<2x256xbf16>
    %c0_6 = arith.constant 0 : index
    %c0_7 = arith.constant 0 : index
    %9 = vector.load %arg4[%c0_6, %c0_7] : memref<256x128xbf16, #tpu.memory_space<vmem>>, vector<256x128xbf16>
    %cst_8 = arith.constant dense<0.000000e+00> : vector<2x128xf32>
    %10 = tpu.matmul %8, %9, %cst_8 {dimension_numbers = #tpu.dot_dimension_numbers<[1], [0], [0], [1], [0, 0, 1, 1], [], []>} : vector<2x256xbf16>, vector<256x128xbf16>, vector<2x128xf32> -> vector<2x128xf32>
    %c0_9 = arith.constant 0 : index
    %c0_10 = arith.constant 0 : index
    %11 = vector.load %arg5[%c0_9, %c0_10] : memref<1x128xf32, #tpu.memory_space<vmem>>, vector<1x128xf32>
    %12 = vector.broadcast %11 : vector<1x128xf32> to vector<2x128xf32>
    %13 = arith.addf %10, %12 : vector<2x128xf32>
    %c0_11 = arith.constant 0 : index
    %c0_12 = arith.constant 0 : index
    %14 = vector.load %arg6[%c0_11, %c0_12] : memref<2x128xf32, #tpu.memory_space<vmem>>, vector<2x128xf32>
    tpu.vector_store %arg6[%c0_11, %c0_12], %13 {strides = array<i32>} : memref<2x128xf32, #tpu.memory_space<vmem>>, vector<2x128xf32>,
    return
  }
  func.func @transform_0(%arg0: i32) -> (i32, i32) {
    %c0_i32 = arith.constant 0 : i32
    %c0_i32_0 = arith.constant 0 : i32
    return %arg0, %c0_i32 : i32, i32
  }
  func.func @transform_1(%arg0: i32) -> (i32, i32) {
    %c0_i32 = arith.constant 0 : i32
    %c0_i32_0 = arith.constant 0 : i32
    %c0_i32_1 = arith.constant 0 : i32
    return %c0_i32, %c0_i32_0 : i32, i32
  }
  func.func @transform_2(%arg0: i32) -> (i32, i32) {
    %c0_i32 = arith.constant 0 : i32
    %c0_i32_0 = arith.constant 0 : i32
    %c0_i32_1 = arith.constant 0 : i32
    return %c0_i32, %c0_i32_0 : i32, i32
  }
  func.func @transform_3(%arg0: i32) -> (i32, i32) {
    %c0_i32 = arith.constant 0 : i32
    %c0_i32_0 = arith.constant 0 : i32
    %c0_i32_1 = arith.constant 0 : i32
    return %c0_i32, %c0_i32_0 : i32, i32
  }
  func.func @transform_4(%arg0: i32) -> (i32, i32) {
    %c0_i32 = arith.constant 0 : i32
    %c0_i32_0 = arith.constant 0 : i32
    %c0_i32_1 = arith.constant 0 : i32
    return %c0_i32, %c0_i32_0 : i32, i32
  }
  func.func @transform_5(%arg0: i32) -> (i32, i32) {
    %c0_i32 = arith.constant 0 : i32
    %c0_i32_0 = arith.constant 0 : i32
    return %arg0, %c0_i32 : i32, i32
  }
}

</mosaic_0001>

<bundles_post_ra>
// kernel: tpu_custom_call.1
= control target key start
LH: loop header
LB: loop body
LE: loop exit
PB: predicated region body
PF: predicated region fallthrough
CT: control target
= control target key end

     0   :  { %10 = vsyncpa [#allocation3], 0  ;;  %s654_s0 = inlined_call_operand.hbm [shape: bf16[2,128], index: 0, kind: input, shape index: {}]   ;;  %s655_s1 = inlined_call_operand.hbm [shape: bf16[128,256], index: 1, kind: input, shape index: {}]   ;;  %s656_s2 = inlined_call_operand.vmem [shape: f32[1,256], index: 2, kind: input, shape index: {}]   ;;  %s657_s3 = inlined_call_operand.hbm [shape: bf16[256,128], index: 3, kind: input, shape index: {}]   ;;  %s658_s4 = inlined_call_operand.vmem [shape: f32[1,128], index: 4, kind: input, shape index: {}]   ;;  %s659_s5 = inlined_call_operand.hbm [shape: f32[2,128], index: 5, kind: output, shape index: {}]  }
   0x1   :  { %11 = vsyncpa [#allocation6], 0 }
   0x2   :  { %12 = vsyncpa [#allocation4], 0  ;;  %s597_s18 = smov [#allocation5]  }
   0x3   :  { %s28_s19 = sshll.u32 %s597_s18, 4  ;;  %s29_s19 = int_to_ptr.vmem [resolvable:$true] %s28_s19 }
   0x4   :  { %s519_s20 = scalar_lea.vmem %s29_s19, 2048  ;;  %p524_p1 = scmp.lt.s32.totalorder %s29_s19, %s29_s19 }
   0x5   :  { %p520_p0 = scmp.ne.s32.totalorder %s29_s19, %s519_s20  ;;  %p525_p2 = scmp.lt.s32.totalorder %s519_s20, %s519_s20 }
   0x7   :  { %p526_p3 = por %p525_p2, %p524_p1 }
   0x9   :  { %p527_p4 = pnand %p526_p3, %p520_p0 }
   0xb   :  { %530 = shalt.err (!%p527_p4)
}
   0xc   :  { %s598_s21 = smov 128   ;;  %s599_s22 = smov 8  }
   0xd   :  { %34 = dma.hbm_to_vmem [thread:$0]  %s655_s1, 2048, %s29_s19, [#allocation6], %s598_s21, %s598_s21, %s599_s22  }
   0xe   :  { %s600_s25 = smov [#allocation2]   ;;  %s601_s27 = smov [#allocation7]  }
   0xf   :  { %s19_s26 = sshll.u32 %s600_s25, 4  ;;  %s42_s28 = sshll.u32 %s601_s27, 4  ;;  %s20_s26 = int_to_ptr.vmem [resolvable:$true] %s19_s26  ;;  %s43_s28 = int_to_ptr.vmem [resolvable:$true] %s42_s28 }
  0x10   :  { %s539_s29 = scalar_lea.vmem %s20_s26, 16  ;;  %s543_s30 = scalar_lea.vmem %s20_s26, 32 }
  0x11   :  { %p540_p5 = scmp.ne.s32.totalorder %s20_s26, %s539_s29  ;;  %p544_p6 = scmp.lt.s32.totalorder %s20_s26, %s20_s26 }
  0x12   :  { %p545_p7 = scmp.lt.s32.totalorder %s543_s30, %s539_s29 }
  0x14   :  { %p546_p8 = por %p545_p7, %p544_p6 }
  0x16   :  { %p547_p9 = pnand %p546_p8, %p540_p5 }
  0x18   :  { %550 = shalt.err (!%p547_p9)
}
  0x19   :  { %22 = dma.hbm_to_vmem [thread:$0]  %s654_s0, 16, %s20_s26, [#allocation3]  }
  0x1a   :  { %s559_s8 = scalar_lea.vmem %s43_s28, 2048  ;;  %p564_p11 = scmp.lt.s32.totalorder %s43_s28, %s43_s28 }
  0x1b   :  { %p560_p10 = scmp.ne.s32.totalorder %s43_s28, %s559_s8  ;;  %p565_p12 = scmp.lt.s32.totalorder %s559_s8, %s559_s8 }
  0x1d   :  { %p566_p13 = por %p565_p12, %p564_p11 }
  0x1f   :  { %p567_p0 = pnand %p566_p13, %p560_p10 }
  0x21   :  { %570 = shalt.err (!%p567_p0)
}
  0x22   :  { %s602_s1 = smov 64   ;;  %s603_s9 = smov 4  }
  0x23   :  { %48 = dma.hbm_to_vmem [thread:$0]  %s657_s3, 2048, %s43_s28, [#allocation6], %s602_s1, %s602_s1, %s603_s9  }
  0x24   :  { %591 = dma.done.wait [#allocation3], 16  }
  0x25   :  { %592 = vsyncadd [#allocation3], 4294967280 }
  0x26   :  { %593 = dma.done.wait [#allocation6], 4096  }
  0x27   :  { %594 = vsyncadd [#allocation6], 4294963200  ;;  %v604_v0 = vmov 0   ;;  %v471_v1 = vld [vmem:[#allocation5 + $0x74] ss:$8 sps:$4 sm:$0xff]   ;;  %v499_v15 = vld [vmem:[#allocation7 + $0x68] sm:$0xff]   ;;  %v80_v34 = vlaneseq }
  0x28   :  { %202 = vmatprep.mubr.bf16.mxu0 %v604_v0  ;;  %v473_v2 = vld [vmem:[#allocation5 + $0x70] ss:$8 sps:$4 sm:$0xff]   ;;  %170 = vmatprep.subr.bf16.mxu0 %v471_v1  ;;  %v474_v3 = vld [vmem:[#allocation5 + $0x64] ss:$8 sps:$4 sm:$0xff]   ;;  %v476_v4 = vld [vmem:[#allocation5 + $0x60] ss:$8 sps:$4 sm:$0xff]  }
  0x29   :  { %171 = vmatpush1.bf16.msra.mxu0 %v473_v2  ;;  %v477_v5 = vld [vmem:[#allocation5 + $0x54] ss:$8 sps:$4 sm:$0xff]   ;;  %v479_v6 = vld [vmem:[#allocation5 + $0x50] ss:$8 sps:$4 sm:$0xff]   ;;  %v480_v7 = vld [vmem:[#allocation5 + $0x44] ss:$8 sps:$4 sm:$0xff]  }
  0x2a   :  { %172 = vmatprep.subr.bf16.mxu0 %v474_v3  ;;  %v482_v8 = vld [vmem:[#allocation5 + $0x40] ss:$8 sps:$4 sm:$0xff]   ;;  %v483_v9 = vld [vmem:[#allocation5 + $0x34] ss:$8 sps:$4 sm:$0xff]   ;;  %v485_v12 = vld [vmem:[#allocation5 + $0x30] ss:$8 sps:$4 sm:$0xff]  }
  0x2b   :  { %v495_v10 = vld [vmem:[#allocation7 + $0x78] sm:$0xff]   ;;  %v497_v13 = vld [vmem:[#allocation7 + $0x70] sm:$0xff]   ;;  %v486_v16 = vld [vmem:[#allocation5 + $0x24] ss:$8 sps:$4 sm:$0xff]   ;;  %v81_v35 = vshrl.u32 %v80_v34, 7 }
  0x2c   :  { %v496_v11 = vld [vmem:[#allocation7 + $0x38] sm:$0xff]   ;;  %440 = vmatprep.subr.bf16.mxu1 %v495_v10  ;;  %v498_v14 = vld [vmem:[#allocation7 + $0x30] sm:$0xff]   ;;  %v488_v17 = vld [vmem:[#allocation5 + $0x20] ss:$8 sps:$4 sm:$0xff]  }
  0x2d   :  { %173 = vmatpush1.bf16.msra.mxu0 %v476_v4  ;;  %441 = vmatpush3.bf16.msra.mxu1 %v496_v11  ;;  %v500_v18 = vld [vmem:[#allocation7 + $0x28] sm:$0xff]   ;;  %v501_v19 = vld [vmem:[#allocation7 + $0x60] sm:$0xff]   ;;  %v489_v20 = vld [vmem:[#allocation5 + $0x14] ss:$8 sps:$4 sm:$0xff]   ;;  %v82_v36 = vsub.s32 0, %v81_v35  ;;  %v86_v38 = vsub.s32 1, %v81_v35 }
  0x2e   :  { %174 = vmatprep.subr.bf16.mxu0 %v477_v5  ;;  %442 = vmatprep.subr.bf16.mxu1 %v497_v13  ;;  %v491_v21 = vld [vmem:[#allocation5 + $0x10] ss:$8 sps:$4 sm:$0xff]   ;;  %v492_v22 = vld [vmem:[#allocation5 + $0x4] ss:$8 sps:$4 sm:$0xff]   ;;  %v494_v26 = vld [vmem:[#allocation5] ss:$8 sps:$4 sm:$0xff]  }
  0x2f   :  { %v502_v23 = vld [vmem:[#allocation7 + $0x20] sm:$0xff]   ;;  %v503_v24 = vld [vmem:[#allocation7 + $0x58] sm:$0xff]   ;;  %v505_v27 = vld [vmem:[#allocation7 + $0x50] sm:$0xff]  }
  0x30   :  { %v504_v25 = vld [vmem:[#allocation7 + $0x18] sm:$0xff]   ;;  %v506_v28 = vld [vmem:[#allocation7 + $0x10] sm:$0xff]   ;;  %v507_v30 = vld [vmem:[#allocation7 + $0x48] sm:$0xff]  }
  0x31   :  { %175 = vmatpush1.bf16.msra.mxu0 %v479_v6  ;;  %443 = vmatpush3.bf16.msra.mxu1 %v498_v14  ;;  %v61_v29 = vld [vmem:[#allocation2] sm:$0x1]  ;;  %v508_v31 = vld [vmem:[#allocation7 + $0x8] sm:$0xff]   ;;  %v509_v32 = vld [vmem:[#allocation7 + $0x40] sm:$0xff]  }
  0x32   :  { %176 = vmatprep.subr.bf16.mxu0 %v480_v7  ;;  %444 = vmatprep.subr.bf16.mxu1 %v499_v15  ;;  %v510_v33 = vld [vmem:[#allocation7] sm:$0xff]   ;;  %v78_v37 = vld [vmem:[%s656_s2] sm:$0x3]  ;;  %s605_s2 = smov [#allocation8]  }
  0x33   :  { %v83_v39 = vrot.slane %v78_v37, %v82_v36  ;;  %v87_v40 = vrot.slane %v78_v37, %v86_v38  ;;  %v423_v52 = vld [vmem:[%s658_s4] ss:$0 sm:$0xff]  ;;  %s397_s14 = sshll.u32 %s605_s2, 4  ;;  %s398_s14 = int_to_ptr.vmem [resolvable:$true] %s397_s14 }
  0x34   :  { %s571_s15 = scalar_lea.vmem %s398_s14, 32  ;;  %p576_p2 = scmp.lt.s32.totalorder %s398_s14, %s398_s14 }
  0x35   :  { %177 = vmatpush1.bf16.msra.mxu0 %v482_v8  ;;  %445 = vmatpush3.bf16.msra.mxu1 %v500_v18  ;;  %p572_p1 = scmp.ne.s32.totalorder %s398_s14, %s571_s15  ;;  %p577_p3 = scmp.lt.s32.totalorder %s571_s15, %s571_s15 }
  0x36   :  { %178 = vmatprep.subr.bf16.mxu0 %v483_v9  ;;  %446 = vmatprep.subr.bf16.mxu1 %v501_v19 }
  0x37   :  { %p578_p4 = por %p577_p3, %p576_p2 }
  0x39   :  { %179 = vmatpush1.bf16.msra.mxu0 %v485_v12  ;;  %447 = vmatpush3.bf16.msra.mxu1 %v502_v23  ;;  %p579_p5 = pnand %p578_p4, %p572_p1 }
  0x3a   :  { %180 = vmatprep.subr.bf16.mxu0 %v486_v16  ;;  %448 = vmatprep.subr.bf16.mxu1 %v503_v24 }
  0x3d   :  { %181 = vmatpush1.bf16.msra.mxu0 %v488_v17  ;;  %449 = vmatpush3.bf16.msra.mxu1 %v504_v25 }
  0x3e   :  { %182 = vmatprep.subr.bf16.mxu0 %v489_v20  ;;  %450 = vmatprep.subr.bf16.mxu1 %v505_v27 }
  0x41   :  { %183 = vmatpush1.bf16.msra.mxu0 %v491_v21  ;;  %451 = vmatpush3.bf16.msra.mxu1 %v506_v28 }
  0x42   :  { %184 = vmatprep.subr.bf16.mxu0 %v492_v22  ;;  %452 = vmatprep.subr.bf16.mxu1 %v507_v30 }
  0x45   :  { %185 = vmatpush1.bf16.msra.mxu0 %v494_v26  ;;  %453 = vmatpush3.bf16.msra.mxu1 %v508_v31 }
  0x46   :  { %454 = vmatprep.subr.bf16.mxu1 %v509_v32 }
  0x48   :  { %203 = vmatmul.mubr.bf16.vlgmr.msra.gmra.mxu0 %v61_v29 }
  0x49   :  { %455 = vmatpush3.bf16.msra.mxu1 %v510_v33 }
 0x108   :  { %v204_v41 = vpop.f32.mrf.mxu0 }
 0x109   :  { %v205_v42 = vadd.f32 %v204_v41, %v83_v39 }
 0x10a   :  { %v206_v43 = vpop.f32.mrf.mxu0 }
 0x10b   :  { %v207_v44 = vadd.f32 %v206_v43, %v87_v40  ;;  %v211_v45 = vmax.f32 %v205_v42, 0.0 }
 0x10c   :  { %v208_v46 = vpop.f32.mrf.mxu0 }
 0x10d   :  { %v212_v47 = vmax.f32 %v207_v44, 0.0  ;;  %v213_v50 = vpack.c.bf16 %v211_v45, %v211_v45 }
 0x10e   :  { %v209_v48 = vpop.f32.mrf.mxu0 }
 0x10f   :  { %v214_v49 = vpack.c.bf16 %v212_v47, %v212_v47 }
 0x111   :  { %382 = vmatprep.mubr.bf16.mxu1 %v214_v49 }
 0x112   :  { %383 = vmatmul.mubr.bf16.vlgmr.msra.gmra.mxu1 %v213_v50 }
 0x1d2   :  { %v456_v51 = vpop.f32.mrf.mxu1 }
 0x1d4   :  { %v457_v53 = vpop.f32.mrf.mxu1 }
 0x1d5   :  { %v458_v54 = vadd.f32 %v457_v53, %v456_v51 }
 0x1d6   :  { %v459_v55 = vpop.f32.mrf.mxu1 }
 0x1d7   :  { %v385_v56 = vadd.f32 %v458_v54, %v423_v52 }
 0x1d8   :  { %v460_v57 = vpop.f32.mrf.mxu1 }
 0x1d9   :  { %390 = vst [vmem:[#allocation8] sm:$0x3] %v385_v56 }
 0x1da   :  { %582 = shalt.err (!%p579_p5)
}
 0x1db   :  { %400 = dma.vmem_to_hbm [thread:$0]  %s398_s14, 32, %s659_s5, [#allocation4]  }
 0x1dc   :  { %595 = dma.done.wait [#allocation4], 32  }
 0x1dd   :  { %596 = vsyncadd [#allocation4], 4294967264 }
 0x1de   :  { %404 = vsyncpa [#allocation3], 1 }
 0x1df   :  { %405 = vsyncpa [#allocation6], 1 }
 0x1e0   :  { %406 = vsyncpa [#allocation4], 1 }

</bundles_post_ra>
